<compile_context>
chip_gen: v7x
topology: tpu7x:2x2x1
jax: 0.10.0
libtpu: 0.0.40
codegen_flags: <defaults>
</compile_context>

<pallas_src>
import functools

import jax
import jax.numpy as jnp
from jax.experimental import pallas as pl
from jax.experimental.pallas import tpu as pltpu

_LANE = 128
_SUBLANE = 8
_ONEHOT_BUDGET_BYTES = 4 << 20  # cap for the in-kernel (b_tile, s_pad) one-hot


def _round_up(x, m):
    return (x + m - 1) // m * m


# ----------------------------------------------------------------------------
# Kernel: per batch tile, build one-hot on the VPU and hit the MXU once.
# ----------------------------------------------------------------------------
def tabular_onehot_matmul_kernel(states_ref, table_ref, out_ref):
    # states_ref : (b_tile, 1) int32 VMEM block of (clamped) state indices
    # table_ref  : (s_pad, a_pad) f32 VMEM, resident across grid steps
    # out_ref    : (b_tile, a_pad) f32, lane-dense (a_pad multiple of 128)
    b_tile = out_ref.shape[0]
    s_pad = table_ref.shape[0]

    idx = states_ref[...]                                          # (b_tile, 1)
    col = jax.lax.broadcasted_iota(jnp.int32, (b_tile, s_pad), 1)  # VPU iota
    onehot = (col == idx).astype(table_ref.dtype)                  # VPU cmp+sel
    out_ref[...] = jnp.dot(                                        # MXU
        onehot, table_ref[...], preferred_element_type=jnp.float32
    ).astype(out_ref.dtype)


# ----------------------------------------------------------------------------
# Run-once parameter prep (hoisted out of the per-call path).
# ----------------------------------------------------------------------------
def prepare_tabular_params(weight, bias, dtype=jnp.float32):
    """weight: (num_actions, num_states) PyTorch nn.Linear layout; bias: (num_actions,).
    Returns a (s_pad, a_pad) lookup table with table[s, a] = weight[a, s] + bias[a],
    zero-padded to sublane/lane multiples. dtype=jnp.bfloat16 halves VMEM if needed."""
    num_actions, num_states = weight.shape
    s_pad = _round_up(num_states, _SUBLANE)
    a_pad = _round_up(num_actions, _LANE)
    rows = weight.T.astype(jnp.float32) + bias.astype(jnp.float32)[None, :]
    table = jnp.zeros((s_pad, a_pad), jnp.float32)
    table = table.at[:num_states, :num_actions].set(rows)
    return table.astype(dtype)


# ----------------------------------------------------------------------------
# VMEM budget: footprint-derived, per-generation clamp.
# ----------------------------------------------------------------------------
def _vmem_limit_bytes(*, table_bytes, table_buffers, out_tile_bytes,
                      states_tile_bytes, onehot_bytes):
    need = (table_bytes * table_buffers
            + 2 * (out_tile_bytes + states_tile_bytes)   # double-buffered tiles
            + onehot_bytes
            + (4 << 20))                                 # slack
    try:
        physical = int(pltpu.get_tpu_info().vmem_capacity_bytes)
    except Exception:
        physical = 64 << 20                              # v7x-conservative fallback
    cap = (physical * 3) // 4                            # ~48 MiB v7x / ~96 MiB v5e,v6e
    return max(16 << 20, min(_round_up(need, 1 << 20), cap))


def _table_spec(s_pad, a_pad, single_buffer):
    # Constant index_map -> table DMA'd once and resident across grid steps.
    if single_buffer and hasattr(pl, "Buffered"):
        return pl.BlockSpec((s_pad, a_pad), lambda i: (0, 0),
                            pipeline_mode=pl.Buffered(1))
    return pl.BlockSpec((s_pad, a_pad), lambda i: (0, 0))


# ----------------------------------------------------------------------------
# Forward wrapper.
# ----------------------------------------------------------------------------
@functools.partial(
    jax.jit,
    static_argnames=("num_states", "num_actions", "block_rows",
                     "single_buffer_table"),
)
def _tabular_forward_impl(states, table, *, num_states, num_actions,
                          block_rows, single_buffer_table):
    B = states.shape[0]
    s_pad, a_pad = table.shape

    # Clamp OOB indices (PyTorch's scatter_ one_hot would raise; clamping
    # avoids undefined in-kernel VMEM reads — documented divergence).
    s = jnp.clip(states.astype(jnp.int32), 0, num_states - 1)

    # ---- batch tiling ------------------------------------------------------
    b_tile = min(_round_up(block_rows, _SUBLANE), _round_up(B, _SUBLANE))
    # Ensure >=2 grid tiles when the batch allows it (v7x megacore sharding).
    half = _round_up((B + 1) // 2, _SUBLANE)
    b_tile = min(b_tile, max(half, _SUBLANE))
    # Keep the in-kernel (b_tile, s_pad) one-hot within a few MiB.
    onehot_rows_cap = max(
        _SUBLANE,
        (_ONEHOT_BUDGET_BYTES // max(s_pad * 4, 1)) // _SUBLANE * _SUBLANE)
    b_tile = min(b_tile, onehot_rows_cap)
    b_padded = _round_up(B, b_tile)

    # Padded rows carry state 0; their outputs are deterministic and sliced off.
    s = jnp.pad(s, (0, b_padded - B)).reshape(b_padded, 1)

    table_buffers = 1 if single_buffer_table else 2
    vmem_limit = _vmem_limit_bytes(
        table_bytes=s_pad * a_pad * table.dtype.itemsize,
        table_buffers=table_buffers,
        out_tile_bytes=b_tile * a_pad * 4,
        states_tile_bytes=b_tile * 4,
        onehot_bytes=b_tile * s_pad * 4,
    )

    out = pl.pallas_call(
        tabular_onehot_matmul_kernel,
        out_shape=jax.ShapeDtypeStruct((b_padded, a_pad), jnp.float32),
        grid_spec=pltpu.PrefetchScalarGridSpec(
            num_scalar_prefetch=0,
            grid=(b_padded // b_tile,),
            in_specs=[
                pl.BlockSpec((b_tile, 1), lambda i: (i, 0)),      # state indices
                _table_spec(s_pad, a_pad, single_buffer_table),   # resident table
            ],
            out_specs=pl.BlockSpec((b_tile, a_pad), lambda i: (i, 0)),
        ),
        compiler_params=pltpu.CompilerParams(
            dimension_semantics=("parallel",),   # shard batch tiles across TCs
            vmem_limit_bytes=vmem_limit,
        ),
    )(s, table)

    return out[:B, :num_actions]


_SINGLE_BUFFER_TABLE_OK = None  # cached: does this JAX accept pl.Buffered(1)?


def tabular_network_forward(states, table, *, num_states, num_actions,
                            block_rows=1024):
    """states: (B,) int indices; table: from prepare_tabular_params.
    Returns (B, num_actions) float32 == one_hot(states) @ W^T + bias."""
    global _SINGLE_BUFFER_TABLE_OK
    kw = dict(num_states=num_states, num_actions=num_actions,
              block_rows=block_rows)
    if _SINGLE_BUFFER_TABLE_OK is None:
        try:
            out = _tabular_forward_impl(states, table,
                                        single_buffer_table=True, **kw)
            out = jax.block_until_ready(out)
            _SINGLE_BUFFER_TABLE_OK = True
            return out
        except Exception:
            _SINGLE_BUFFER_TABLE_OK = False  # fall back to double-buffered table
    return _tabular_forward_impl(states, table,
                                 single_buffer_table=_SINGLE_BUFFER_TABLE_OK,
                                 **kw)


if __name__ == "__main__":
    # Synthetic "env": num_states=16, num_actions=4; batch of 8 state indices.
    num_states = 16
    num_actions = 4
    B = 8

    key = jax.random.PRNGKey(0)
    k_w, k_b, k_s = jax.random.split(key, 3)

    # Deterministic Linear(num_states, num_actions) params (PyTorch weight layout).
    weight = jax.random.normal(k_w, (num_actions, num_states), dtype=jnp.float32) * 0.1
    bias = jax.random.normal(k_b, (num_actions,), dtype=jnp.float32) * 0.1
    states = jax.random.randint(k_s, (B,), 0, num_states, dtype=jnp.int32)

    # Run-once param prep (transpose + bias fold + padding).
    table = prepare_tabular_params(weight, bias)

    out = tabular_network_forward(
        states, table, num_states=num_states, num_actions=num_actions
    )
    out = jax.block_until_ready(out)

    # Reference check in plain JAX (one_hot -> linear).
    onehot_ref = jax.nn.one_hot(states, num_states, dtype=jnp.float32)
    ref = onehot_ref @ weight.T + bias
    assert out.shape == (B, num_actions)
    assert jnp.allclose(out, ref, atol=1e-5), "mismatch vs reference"

    print("KERNEL_OK")
</pallas_src>

<mosaic_0001>
module attributes {stable_mosaic.version = 11 : i64} {
  func.func @tabular_onehot_matmul_kernel(%arg0: i32, %arg1: memref<8x1xi32, #tpu.memory_space<vmem>>, %arg2: memref<16x128xf32, #tpu.memory_space<vmem>>, %arg3: memref<8x128xf32, #tpu.memory_space<vmem>>) attributes {dimension_semantics = [#tpu.dimension_semantics<parallel>], iteration_bounds = array<i64: 1>, scalar_prefetch = 0 : i64, scratch_operands = 0 : i64, tpu.core_type = #tpu.core_type<tc>, window_params = [{transform_indices = @transform_0, window_bounds = array<i64: 8, 1>}, {pipeline_mode = #tpu.pipeline_mode<synchronous>, transform_indices = @transform_1, window_bounds = array<i64: 16, 128>}, {transform_indices = @transform_2, window_bounds = array<i64: 8, 128>}]} {
    %c0 = arith.constant 0 : index
    %c0_0 = arith.constant 0 : index
    %0 = vector.load %arg1[%c0, %c0_0] : memref<8x1xi32, #tpu.memory_space<vmem>>, vector<8x1xi32>
    %1 = tpu.iota {dimensions = array<i32: 1>} : vector<8x16xi32>
    %2 = vector.broadcast %0 : vector<8x1xi32> to vector<8x16xi32>
    %3 = arith.cmpi eq, %1, %2 : vector<8x16xi32>
    %4 = arith.extui %3 : vector<8x16xi1> to vector<8x16xi32>
    %5 = arith.sitofp %4 : vector<8x16xi32> to vector<8x16xf32>
    %c0_1 = arith.constant 0 : index
    %c0_2 = arith.constant 0 : index
    %6 = vector.load %arg2[%c0_1, %c0_2] : memref<16x128xf32, #tpu.memory_space<vmem>>, vector<16x128xf32>
    %cst = arith.constant dense<0.000000e+00> : vector<8x128xf32>
    %7 = tpu.matmul %5, %6, %cst {dimension_numbers = #tpu.dot_dimension_numbers<[1], [0], [0], [1], [0, 0, 1, 1], [], []>} : vector<8x16xf32>, vector<16x128xf32>, vector<8x128xf32> -> vector<8x128xf32>
    %c0_3 = arith.constant 0 : index
    %c0_4 = arith.constant 0 : index
    %8 = vector.load %arg3[%c0_3, %c0_4] : memref<8x128xf32, #tpu.memory_space<vmem>>, vector<8x128xf32>
    tpu.vector_store %arg3[%c0_3, %c0_4], %7 {strides = array<i32>} : memref<8x128xf32, #tpu.memory_space<vmem>>, vector<8x128xf32>,
    return
  }
  func.func @transform_0(%arg0: i32) -> (i32, i32) {
    %c0_i32 = arith.constant 0 : i32
    %c0_i32_0 = arith.constant 0 : i32
    return %arg0, %c0_i32 : i32, i32
  }
  func.func @transform_1(%arg0: i32) -> (i32, i32) {
    %c0_i32 = arith.constant 0 : i32
    %c0_i32_0 = arith.constant 0 : i32
    %c0_i32_1 = arith.constant 0 : i32
    return %c0_i32, %c0_i32_0 : i32, i32
  }
  func.func @transform_2(%arg0: i32) -> (i32, i32) {
    %c0_i32 = arith.constant 0 : i32
    %c0_i32_0 = arith.constant 0 : i32
    return %arg0, %c0_i32 : i32, i32
  }
}

module attributes {stable_mosaic.version = 11 : i64} {
  func.func @tabular_onehot_matmul_kernel(%arg0: i32, %arg1: memref<8x1xi32, #tpu.memory_space<vmem>>, %arg2: memref<16x128xf32, #tpu.memory_space<vmem>>, %arg3: memref<8x128xf32, #tpu.memory_space<vmem>>) attributes {dimension_semantics = [#tpu.dimension_semantics<parallel>], iteration_bounds = array<i64: 1>, scalar_prefetch = 0 : i64, scratch_operands = 0 : i64, tpu.core_type = #tpu.core_type<tc>, window_params = [{transform_indices = @transform_0, window_bounds = array<i64: 8, 1>}, {pipeline_mode = #tpu.pipeline_mode<synchronous>, transform_indices = @transform_1, window_bounds = array<i64: 16, 128>}, {transform_indices = @transform_2, window_bounds = array<i64: 8, 128>}]} {
    %c0 = arith.constant 0 : index
    %c0_0 = arith.constant 0 : index
    %0 = vector.load %arg1[%c0, %c0_0] : memref<8x1xi32, #tpu.memory_space<vmem>>, vector<8x1xi32>
    %1 = tpu.iota {dimensions = array<i32: 1>} : vector<8x16xi32>
    %2 = vector.broadcast %0 : vector<8x1xi32> to vector<8x16xi32>
    %3 = arith.cmpi eq, %1, %2 : vector<8x16xi32>
    %4 = arith.extui %3 : vector<8x16xi1> to vector<8x16xi32>
    %5 = arith.sitofp %4 : vector<8x16xi32> to vector<8x16xf32>
    %c0_1 = arith.constant 0 : index
    %c0_2 = arith.constant 0 : index
    %6 = vector.load %arg2[%c0_1, %c0_2] : memref<16x128xf32, #tpu.memory_space<vmem>>, vector<16x128xf32>
    %cst = arith.constant dense<0.000000e+00> : vector<8x128xf32>
    %7 = tpu.matmul %5, %6, %cst {dimension_numbers = #tpu.dot_dimension_numbers<[1], [0], [0], [1], [0, 0, 1, 1], [], []>} : vector<8x16xf32>, vector<16x128xf32>, vector<8x128xf32> -> vector<8x128xf32>
    %c0_3 = arith.constant 0 : index
    %c0_4 = arith.constant 0 : index
    %8 = vector.load %arg3[%c0_3, %c0_4] : memref<8x128xf32, #tpu.memory_space<vmem>>, vector<8x128xf32>
    tpu.vector_store %arg3[%c0_3, %c0_4], %7 {strides = array<i32>} : memref<8x128xf32, #tpu.memory_space<vmem>>, vector<8x128xf32>,
    return
  }
  func.func @transform_0(%arg0: i32) -> (i32, i32) {
    %c0_i32 = arith.constant 0 : i32
    %c0_i32_0 = arith.constant 0 : i32
    return %arg0, %c0_i32 : i32, i32
  }
  func.func @transform_1(%arg0: i32) -> (i32, i32) {
    %c0_i32 = arith.constant 0 : i32
    %c0_i32_0 = arith.constant 0 : i32
    %c0_i32_1 = arith.constant 0 : i32
    return %c0_i32, %c0_i32_0 : i32, i32
  }
  func.func @transform_2(%arg0: i32) -> (i32, i32) {
    %c0_i32 = arith.constant 0 : i32
    %c0_i32_0 = arith.constant 0 : i32
    return %arg0, %c0_i32 : i32, i32
  }
}

</mosaic_0001>

<bundles_post_ra>
// kernel: _tabular_forward_impl.1
= control target key start
LH: loop header
LB: loop body
LE: loop exit
PB: predicated region body
PF: predicated region fallthrough
CT: control target
= control target key end

     0   :  { %v121_v0 = vmov 0   ;;  %v122_v2 = vmov 0.0|0.0   ;;  %vm123_vm0 = vmmov 0   ;;  %v124_v6 = vmov 0.0   ;;  %s152_s0 = inlined_call_operand.vmem [shape: s32[8,1], index: 0, kind: input, shape index: {}]   ;;  %s153_s1 = inlined_call_operand.vmem [shape: f32[16,128], index: 1, kind: input, shape index: {}]   ;;  %s154_s2 = inlined_call_operand.vmem [shape: f32[8,128], index: 2, kind: output, shape index: {}]  }
   0x1   :  { %120 = vset.pattern.permute.xlu0 %v121_v0  ;;  %v11_v1 = vld [vmem:[%s152_s0] sm:$0xff]  ;;  %113 = vmatprep.subr.bf16.mxu0 %v122_v2  ;;  %v21_v4 = vld [vmem:[%s153_s1 + $0x8] sm:$0xff]  ;;  %v12_v7 = vlaneseq  ;;  %vm22_vm1 = vcmask 130048  }
   0x2   :  { %v20_v3 = vld [vmem:[%s153_s1] sm:$0xff]  ;;  %15 = vperm.xlu0 %120, %v11_v1   ;;  %110 = vmatprep.mubr.msk.f32.mxu0 %vm123_vm0, %v124_v6 }
   0x3   :  { %v114_v5 = vpack.c.bf16 %v21_v4, %v20_v3  ;;  %v13_v8 = vand.u32 127, %v12_v7 }
   0x5   :  { %115 = vmatpush3.bf16.msra.mxu0 %v114_v5 }
  0x81   :  { %v16_v9 = vpop.permute.xlu0 %15 }
  0x82   :  { %vm17_vm2 = vcmp.eq.s32.totalorder %v13_v8, %v16_v9 }
  0x83   :  { %v101_v10 = vsel %vm17_vm2, 1.0, %v124_v6 }
  0x84   :  { %111 = vmatmul.mubr.msk.f32.vlgmr.msra.gmra.mrb[0].mxu0 %vm22_vm1, %v101_v10 }
 0x157   :  { %v92_v11 = vpop.f32.mrb[0].mxu0 }
 0x158   :  { %96 = vst [vmem:[%s154_s2] sm:$0xff] %v92_v11  ;;  %v112_v12 = vpop.f32.mrb[1].mxu0 }

// kernel: _tabular_forward_impl.1
= control target key start
LH: loop header
LB: loop body
LE: loop exit
PB: predicated region body
PF: predicated region fallthrough
CT: control target
= control target key end

     0   :  { %v121_v0 = vmov 0   ;;  %v122_v2 = vmov 0.0|0.0   ;;  %vm123_vm0 = vmmov 0   ;;  %v124_v6 = vmov 0.0   ;;  %s152_s0 = inlined_call_operand.vmem [shape: s32[8,1], index: 0, kind: input, shape index: {}]   ;;  %s153_s1 = inlined_call_operand.vmem [shape: f32[16,128], index: 1, kind: input, shape index: {}]   ;;  %s154_s2 = inlined_call_operand.vmem [shape: f32[8,128], index: 2, kind: output, shape index: {}]  }
   0x1   :  { %120 = vset.pattern.permute.xlu0 %v121_v0  ;;  %v11_v1 = vld [vmem:[%s152_s0] sm:$0xff]  ;;  %113 = vmatprep.subr.bf16.mxu0 %v122_v2  ;;  %v21_v4 = vld [vmem:[%s153_s1 + $0x8] sm:$0xff]  ;;  %v12_v7 = vlaneseq  ;;  %vm22_vm1 = vcmask 130048  }
   0x2   :  { %v20_v3 = vld [vmem:[%s153_s1] sm:$0xff]  ;;  %15 = vperm.xlu0 %120, %v11_v1   ;;  %110 = vmatprep.mubr.msk.f32.mxu0 %vm123_vm0, %v124_v6 }
   0x3   :  { %v114_v5 = vpack.c.bf16 %v21_v4, %v20_v3  ;;  %v13_v8 = vand.u32 127, %v12_v7 }
   0x5   :  { %115 = vmatpush3.bf16.msra.mxu0 %v114_v5 }
  0x81   :  { %v16_v9 = vpop.permute.xlu0 %15 }
  0x82   :  { %vm17_vm2 = vcmp.eq.s32.totalorder %v13_v8, %v16_v9 }
  0x83   :  { %v101_v10 = vsel %vm17_vm2, 1.0, %v124_v6 }
  0x84   :  { %111 = vmatmul.mubr.msk.f32.vlgmr.msra.gmra.mrb[0].mxu0 %vm22_vm1, %v101_v10 }
 0x157   :  { %v92_v11 = vpop.f32.mrb[0].mxu0 }
 0x158   :  { %96 = vst [vmem:[%s154_s2] sm:$0xff] %v92_v11  ;;  %v112_v12 = vpop.f32.mrb[1].mxu0 }

</bundles_post_ra>
